<compile_context>
chip_gen: v6e
topology: v6e:2x2x1
jax: 0.10.0
libtpu: 0.0.40
codegen_flags: <defaults>
</compile_context>

<pallas_src>
import functools

import jax
import jax.numpy as jnp
from jax.experimental import pallas as pl
from jax.experimental.pallas import tpu as pltpu


def _adain_kernel(gamma_ref, beta_ref, x_ref, o_ref, *, hw):
    # x_ref: (c_tile, HW)  gamma_ref/beta_ref: (c_tile, 1)
    xv = x_ref[...].astype(jnp.float32)                        # f32 stats
    mean = jnp.mean(xv, axis=1, keepdims=True)                 # (c_tile, 1)
    diff = xv - mean
    # torch.std defaults to the unbiased estimator (ddof=1).
    var = jnp.sum(diff * diff, axis=1, keepdims=True) / (hw - 1)
    inv_std = 1.0 / (jnp.sqrt(var) + 1e-5)                     # (c_tile, 1)
    scale = gamma_ref[...].astype(jnp.float32) * inv_std       # (c_tile, 1)
    beta = beta_ref[...].astype(jnp.float32)                   # (c_tile, 1)
    o_ref[...] = (diff * scale + beta).astype(o_ref.dtype)


def _pick_c_tile(C, HW, bytes_per_elem):
    """Largest channel tile that (a) keeps an x block ~<=2 MiB and
    (b) satisfies the TPU (8,128) sublane rule (multiple of 8 or full C)."""
    budget = 2 * 1024 * 1024
    max_rows = max(1, budget // max(1, HW * bytes_per_elem))
    if C <= max_rows:
        return C
    for t in (512, 256, 128, 64, 32, 16, 8):
        if t <= max_rows and C % t == 0:
            return t
    # TODO(synk): add an HW-tiled two-pass (stats then normalize) path for
    # huge images whose full spatial extent per channel-tile exceeds VMEM.
    return C


def adain_pallas(x_nchw, mlp, w1, b1, w2, b2):
    N, C, H, W = x_nchw.shape
    HW = H * W

    # --- style path hoisted to one batched XLA matmul (tiny) ---
    w_cat = jnp.concatenate([w1, w2], axis=1)                  # (mlp_ch, 2C)
    b_cat = jnp.concatenate([b1, b2], axis=0)                  # (2C,)
    gb = jnp.dot(mlp, w_cat, preferred_element_type=jnp.float32) + b_cat
    gamma = gb[:, :C].reshape(N, C, 1)
    beta = gb[:, C:].reshape(N, C, 1)

    # --- content path: NCHW -> (N, C, HW) is a free view, no transpose ---
    x_ncl = x_nchw.reshape(N, C, HW)

    c_tile = _pick_c_tile(C, HW, jnp.dtype(x_nchw.dtype).itemsize)
    grid = (N, C // c_tile)

    out = pl.pallas_call(
        functools.partial(_adain_kernel, hw=HW),
        out_shape=jax.ShapeDtypeStruct((N, C, HW), x_nchw.dtype),
        grid=grid,
        in_specs=[
            pl.BlockSpec((None, c_tile, 1), lambda n, c: (n, c, 0)),    # gamma
            pl.BlockSpec((None, c_tile, 1), lambda n, c: (n, c, 0)),    # beta
            pl.BlockSpec((None, c_tile, HW), lambda n, c: (n, c, 0)),   # x
        ],
        out_specs=pl.BlockSpec((None, c_tile, HW), lambda n, c: (n, c, 0)),
        compiler_params=pltpu.CompilerParams(
            dimension_semantics=("parallel", "parallel"),
        ),
    )(gamma, beta, x_ncl)

    return out.reshape(N, C, H, W)


def adain_reference(x, mlp, w1, b1, w2, b2):
    gamma = (mlp @ w1 + b1)[:, :, None, None]
    beta = (mlp @ w2 + b2)[:, :, None, None]
    mean = x.mean(axis=(2, 3), keepdims=True)
    std = x.std(axis=(2, 3), keepdims=True, ddof=1) + 1e-5
    return (x - mean) / std * gamma + beta


if __name__ == "__main__":
    N, in_ch, mlp_ch, H, W = 2, 4, 8, 16, 16

    key = jax.random.PRNGKey(0)
    kx, km, kw1, kw2 = jax.random.split(key, 4)

    x = jax.random.normal(kx, (N, in_ch, H, W), dtype=jnp.float32)
    mlp = jax.random.normal(km, (N, mlp_ch), dtype=jnp.float32)

    # Deterministic kaiming_normal_ init: std = sqrt(2 / fan_in), fan_in = in_ch
    k_std = (2.0 / in_ch) ** 0.5
    w1 = jax.random.normal(kw1, (mlp_ch, in_ch), dtype=jnp.float32) * k_std
    w2 = jax.random.normal(kw2, (mlp_ch, in_ch), dtype=jnp.float32) * k_std
    b1 = jnp.zeros((in_ch,), dtype=jnp.float32)
    b2 = jnp.zeros((in_ch,), dtype=jnp.float32)

    out = adain_pallas(x, mlp, w1, b1, w2, b2)
    out = jax.block_until_ready(out)

    ref = adain_reference(x, mlp, w1, b1, w2, b2)
    assert out.shape == (N, in_ch, H, W)
    assert jnp.allclose(out, ref, atol=1e-4, rtol=1e-4)

    print("KERNEL_OK")
</pallas_src>

<mosaic_0001>
module attributes {stable_mosaic.version = 11 : i64} {
  func.func @_adain_kernel(%arg0: i32, %arg1: i32, %arg2: memref<1x4x1xf32, #tpu.memory_space<vmem>>, %arg3: memref<1x4x1xf32, #tpu.memory_space<vmem>>, %arg4: memref<1x4x256xf32, #tpu.memory_space<vmem>>, %arg5: memref<1x4x256xf32, #tpu.memory_space<vmem>>) attributes {dimension_semantics = [#tpu.dimension_semantics<parallel>, #tpu.dimension_semantics<parallel>], iteration_bounds = array<i64: 2, 1>, scalar_prefetch = 0 : i64, scratch_operands = 0 : i64, tpu.core_type = #tpu.core_type<tc>, window_params = [{transform_indices = @transform_0, window_bounds = array<i64: 1, 4, 1>}, {transform_indices = @transform_1, window_bounds = array<i64: 1, 4, 1>}, {transform_indices = @transform_2, window_bounds = array<i64: 1, 4, 256>}, {transform_indices = @transform_3, window_bounds = array<i64: 1, 4, 256>}]} {
    %c0 = arith.constant 0 : index
    %c0_0 = arith.constant 0 : index
    %c0_1 = arith.constant 0 : index
    %0 = vector.load %arg4[%c0, %c0_0, %c0_1] : memref<1x4x256xf32, #tpu.memory_space<vmem>>, vector<1x4x256xf32>
    %1 = vector.shape_cast %0 : vector<1x4x256xf32> to vector<4x256xf32>
    %cst = arith.constant dense<0.000000e+00> : vector<4xf32>
    %2 = vector.multi_reduction <add>, %1, %cst [1] : vector<4x256xf32> to vector<4xf32>
    %3 = vector.shape_cast %2 : vector<4xf32> to vector<4x1xf32>
    %cst_2 = arith.constant 2.560000e+02 : f32
    %4 = vector.broadcast %cst_2 : f32 to vector<4x1xf32>
    %5 = arith.divf %3, %4 : vector<4x1xf32>
    %6 = vector.broadcast %5 : vector<4x1xf32> to vector<4x256xf32>
    %7 = arith.subf %1, %6 : vector<4x256xf32>
    %8 = arith.mulf %7, %7 : vector<4x256xf32>
    %cst_3 = arith.constant dense<0.000000e+00> : vector<4xf32>
    %9 = vector.multi_reduction <add>, %8, %cst_3 [1] : vector<4x256xf32> to vector<4xf32>
    %10 = vector.shape_cast %9 : vector<4xf32> to vector<4x1xf32>
    %cst_4 = arith.constant 2.550000e+02 : f32
    %11 = vector.broadcast %cst_4 : f32 to vector<4x1xf32>
    %12 = arith.divf %10, %11 : vector<4x1xf32>
    %13 = math.sqrt %12 : vector<4x1xf32>
    %cst_5 = arith.constant 9.99999974E-6 : f32
    %14 = vector.broadcast %cst_5 : f32 to vector<4x1xf32>
    %15 = arith.addf %13, %14 : vector<4x1xf32>
    %cst_6 = arith.constant 1.000000e+00 : f32
    %16 = vector.broadcast %cst_6 : f32 to vector<4x1xf32>
    %17 = arith.divf %16, %15 : vector<4x1xf32>
    %c0_7 = arith.constant 0 : index
    %c0_8 = arith.constant 0 : index
    %c0_9 = arith.constant 0 : index
    %18 = vector.load %arg2[%c0_7, %c0_8, %c0_9] : memref<1x4x1xf32, #tpu.memory_space<vmem>>, vector<1x4x1xf32>
    %19 = vector.shape_cast %18 : vector<1x4x1xf32> to vector<4x1xf32>
    %20 = arith.mulf %19, %17 : vector<4x1xf32>
    %c0_10 = arith.constant 0 : index
    %c0_11 = arith.constant 0 : index
    %c0_12 = arith.constant 0 : index
    %21 = vector.load %arg3[%c0_10, %c0_11, %c0_12] : memref<1x4x1xf32, #tpu.memory_space<vmem>>, vector<1x4x1xf32>
    %22 = vector.shape_cast %21 : vector<1x4x1xf32> to vector<4x1xf32>
    %23 = vector.broadcast %20 : vector<4x1xf32> to vector<4x256xf32>
    %24 = arith.mulf %7, %23 : vector<4x256xf32>
    %25 = vector.broadcast %22 : vector<4x1xf32> to vector<4x256xf32>
    %26 = arith.addf %24, %25 : vector<4x256xf32>
    %c0_13 = arith.constant 0 : index
    %c0_14 = arith.constant 0 : index
    %c0_15 = arith.constant 0 : index
    %27 = vector.load %arg5[%c0_13, %c0_14, %c0_15] : memref<1x4x256xf32, #tpu.memory_space<vmem>>, vector<1x4x256xf32>
    %28 = vector.shape_cast %27 : vector<1x4x256xf32> to vector<4x256xf32>
    %29 = vector.shape_cast %26 : vector<4x256xf32> to vector<1x4x256xf32>
    tpu.vector_store %arg5[%c0_13, %c0_14, %c0_15], %29 {strides = array<i32>} : memref<1x4x256xf32, #tpu.memory_space<vmem>>, vector<1x4x256xf32>,
    return
  }
  func.func @transform_0(%arg0: i32, %arg1: i32) -> (i32, i32, i32) {
    %c0_i32 = arith.constant 0 : i32
    %c0_i32_0 = arith.constant 0 : i32
    return %arg0, %arg1, %c0_i32 : i32, i32, i32
  }
  func.func @transform_1(%arg0: i32, %arg1: i32) -> (i32, i32, i32) {
    %c0_i32 = arith.constant 0 : i32
    %c0_i32_0 = arith.constant 0 : i32
    return %arg0, %arg1, %c0_i32 : i32, i32, i32
  }
  func.func @transform_2(%arg0: i32, %arg1: i32) -> (i32, i32, i32) {
    %c0_i32 = arith.constant 0 : i32
    %c0_i32_0 = arith.constant 0 : i32
    return %arg0, %arg1, %c0_i32 : i32, i32, i32
  }
  func.func @transform_3(%arg0: i32, %arg1: i32) -> (i32, i32, i32) {
    %c0_i32 = arith.constant 0 : i32
    %c0_i32_0 = arith.constant 0 : i32
    return %arg0, %arg1, %c0_i32 : i32, i32, i32
  }
}

</mosaic_0001>

<bundles_post_ra>
// kernel: tpu_custom_call.1
= control target key start
LH: loop header
LB: loop body
LE: loop exit
PB: predicated region body
PF: predicated region fallthrough
CT: control target
= control target key end

     0   :  { %8 = vsyncpa [#allocation3], 0  ;;  %s747_s0 = inlined_call_operand.vmem [shape: f32[2,4,1], index: 0, kind: input, shape index: {}]   ;;  %s748_s1 = inlined_call_operand.vmem [shape: f32[2,4,1], index: 1, kind: input, shape index: {}]   ;;  %s749_s2 = inlined_call_operand.vmem [shape: f32[2,4,256], index: 2, kind: input, shape index: {}]   ;;  %s750_s3 = inlined_call_operand.hbm [shape: f32[2,4,256], index: 3, kind: output, shape index: {}]  }
   0x1   :  { %10 = vsyncpa [#allocation3 + $0x1], 0  ;;  %s634_s12 = smov 0   ;;  %s636_s13 = smov 0  }
   0x2   :  { %s638_s14 = smov 0   ;;  %s640_s15 = smov 0  }
   0x3   :  { %s642_s16 = smov 0   ;;  %s644_s17 = smov 0  }
   0x4 LB: > { %s452_s18 = sadd.s32 4294967295, %s609_s17   ;;  %s453_s19 = sadd.s32 4294967294, %s609_s17   ;;  %s609_s17 = sphi %s644_s17, %s16_s17   ;;  %s605_s16 = sphi %s642_s16, %s757_s16   ;;  %s601_s15 = sphi %s640_s15, %s756_s15   ;;  %s597_s14 = sphi %s638_s14, %s755_s14   ;;  %s593_s13 = sphi %s636_s13, %s754_s13   ;;  %s589_s12 = sphi %s634_s12, %s753_s12  }
   0x5   : > { %s28_s20 = sadd.s32 1, %s605_s16  ;;  %s121_s21 = sadd.s32 1, %s597_s14 }
   0x6   : > { %p30_p0 = scmp.ge.s32.totalorder %s28_s20, 2  ;;  %p131_p1 = scmp.ne.s32.totalorder %s597_s14, %s593_s13 }
   0x7   : > { %p132_p2 = scmp.eq.s32.totalorder %s452_s18, 1  ;;  %p137_p3 = scmp.ne.s32.totalorder %s593_s13, %s589_s12 }
   0x8   : > { %s759_s20 = smov (%p30_p0, %s28_s20), 0  ;;  %p138_p5 = scmp.eq.s32.totalorder %s453_s19, 1 }
   0x9   : > { %p674_p4 = por %p132_p2, %p131_p1  ;;  %s116_s23 = ssub.s32 %s605_s16, %s759_s20 }
   0xa   : > { %p456_p6 = scmp.ge.s32.totalorder %s609_s17, 1  ;;  %p119_p7 = scmp.eq.s32.totalorder %s116_s23, 0 }
   0xb   : > { %p681_p8 = por %p138_p5, %p137_p3  ;;  %p188_p9 = scmp.lt.s32.totalorder %s609_s17, 3 }
   0xc   : > { %s687_s25 = scalar_select %p119_p7, %s597_s14, %s121_s21  }
   0xd   : > { %p189_p10 = pnand %p456_p6, %p188_p9 }
   0xe   : > { %p230_p11 = scmp.lt.s32.totalorder (!%p189_p10), %s601_s15, 1  ;;  %s227_s11 = sand.u32 (!%p189_p10), 1, %s593_s13  }
   0xf   : > { %192 = sbr.rel (%p189_p10) target bundleno = 502 (0x1f6), region = 32  ;;  %s457_s18 = sshll.u32 (!%p189_p10), %s227_s11, 3 }
  0x10   : > { %s468_s19 = sshll.u32 (!%p189_p10), %s601_s15, 7  ;;  %s229_s21 = scalar_lea.vmem (!%p189_p10), [#allocation2], %s457_s18 }
  0x11   : > { %s343_s23 = sshll.u32 (!%p189_p10), %s229_s21, 4  ;;  %s341_s28 = scalar_lea.hbm (!%p189_p10), %s750_s3, %s468_s19  ;;  %s344_s23 = int_to_ptr.vmem [resolvable:$true] %s343_s23 }
  0x12   : > { %s327_s29 = scalar_lea.sflag (!%p189_p10), [#allocation3], %s227_s11 }
  0x14   : > { %s691_s26 = scalar_select %p230_p11, %s601_s15, 1  ;;  %vm257_vm0 = vcmask 1043456   ;;  %v611_v5 = vmov 839922192   ;;  %v269_v7 = vlaneseq  ;;  %v612_v20 = vmov 0  }
  0x15   : > { %v267_v6 = vunpack.c.l.s4 %v611_v5  ;;  %526 = vset.pattern.permute.xlu1 %v612_v20  ;;  %527 = vset.pattern.permute.xlu0 %v612_v20 }
  0x16   : > { %s467_s27 = sshll.u32 %s691_s26, 3  ;;  %v270_v9 = vshrl.u32 %v269_v7, 7  ;;  %s458_s4 = sshll.u32 %s691_s26, 2 }
  0x17   : > { %s252_s30 = scalar_lea.vmem %s749_s2, %s467_s27  ;;  %v268_v8 = vunpack.c.0.s8 %v267_v6  ;;  %s236_s7 = scalar_lea.vmem %s747_s0, %s458_s4 }
  0x18   : > { %v253_v0 = vld [vmem:[%s252_s30] sm:$0xff]  ;;  %s243_s10 = scalar_lea.vmem %s748_s1, %s458_s4  ;;  %s533_s30 = scalar_lea.vmem %s344_s23, 128 }
  0x19   : > { %v255_v1 = vcombine.high %v253_v0, %v253_v0  ;;  %v258_v2 = vsel %vm257_vm0, %v253_v0, 0.0  ;;  %v271_v10 = vsub.s32 %v268_v8, %v270_v9  ;;  %v296_v29 = vld [vmem:[%s236_s7] sm:$0xf]  ;;  %p534_p12 = scmp.ne.s32.totalorder %s344_s23, %s533_s30  ;;  %s613_s4 = smov [#allocation2]  }
  0x1a   : > { %v298_v32 = vld [vmem:[%s243_s10] sm:$0xf]  ;;  %s537_s5 = sshll.u32 %s613_s4, 4  ;;  %s538_s5 = int_to_ptr.vmem [resolvable:$false] %s537_s5 }
  0x1b   : > { %v259_v3 = vsel %vm257_vm0, %v255_v1, 0.0  ;;  %p535_p13 = pnand %p534_p12, %p674_p4  ;;  %s539_s15 = scalar_lea.vmem %s538_s5, 256 }
  0x1c   : > { %v260_v4 = vadd.f32 %v259_v3, %v258_v2  ;;  %p540_p1 = scmp.lt.s32.totalorder %s344_s23, %s538_s5  ;;  %p541_p2 = scmp.lt.s32.totalorder %s539_s15, %s533_s30 }
  0x1d   : > { %p536_p0 = pneg %p535_p13 }
  0x1e   : > { %261 = vadd.xlane.f32.xlu0 %v260_v4  ;;  %p542_p3 = por %p541_p2, %p540_p1 }
  0x20   : > { %p543_p5 = pnand %p542_p3, %p536_p0 }
  0xa7   : > { %v262_v11 = vpop.xlane.xlu0 %261 }
  0xa8   : > { %v264_v12 = vmul.f32 0.00390625, %v262_v11 }
  0xaa   : > { %v272_v13 = vrot.slane %v264_v12, %v271_v10 }
  0xac   : > { %v274_v14 = vsub.f32 %v253_v0, %v272_v13 }
  0xae   : > { %v275_v15 = vmul.f32 %v274_v14, %v274_v14 }
  0xb0   : > { %v277_v16 = vcombine.high %v275_v15, %v275_v15  ;;  %v279_v17 = vsel %vm257_vm0, %v275_v15, 0.0 }
  0xb2   : > { %v280_v18 = vsel %vm257_vm0, %v277_v16, 0.0 }
  0xb3   : > { %v281_v19 = vadd.f32 %v280_v18, %v279_v17 }
  0xb5   : > { %282 = vadd.xlane.f32.xlu0 %v281_v19 }
 0x13e   : > { %v283_v21 = vpop.xlane.xlu0 %282 }
 0x13f   : > { %v285_v22 = vmul.f32 0.003921569, %v283_v21 }
 0x141   : > { %529 = vrsqrt.f32 %v285_v22  ;;  %vm288_vm1 = vcmp.eq.f32.partialorder %v285_v22, inf  ;;  %v291_v25 = vand.u32 2147483648, %v285_v22  ;;  %vm290_vm2 = vcmp.eq.f32.partialorder %v285_v22, 0.0 }
 0x14e   : > { %v530_v23 = vpop.eup %529 }
 0x14f   : > { %v287_v24 = vmul.f32 %v530_v23, %v285_v22 }
 0x151   : > { %v289_v26 = vsel %vm288_vm1, %v285_v22, %v287_v24 }
 0x152   : > { %v292_v27 = vsel %vm290_vm2, %v291_v25, %v289_v26 }
 0x153   : > { %v293_v28 = vadd.f32 1e-05, %v292_v27 }
 0x155   : > { %531 = vrcp.f32 %v293_v28 }
 0x162   : > { %v532_v30 = vpop.eup %531 }
 0x163   : > { %v297_v31 = vmul.f32 %v532_v30, %v296_v29 }
 0x165   : > { %301 = vperm.xlu1 %526, %v297_v31  }
 0x169   : > { %314 = vperm.xlu1 %526, %v298_v32  }
 0x1e0   : > { %v302_v33 = vpop.permute.xlu1 %301 }
 0x1e1   : > { %v309_v34 = vrot.slane %v302_v33, %v271_v10 }
 0x1e3   : > { %v311_v36 = vmul.f32 %v309_v34, %v274_v14 }
 0x1e4   : > { %v315_v35 = vpop.permute.xlu1 %314 }
 0x1e5   : > { %v322_v37 = vrot.slane %v315_v35, %v271_v10 }
 0x1e7   : > { %v324_v38 = vadd.f32 %v322_v37, %v311_v36 }
 0x1e9   : > { %325 = vst [vmem:[%s229_s21] sm:$0xff] %v324_v38 }
 0x1ea   : > { %546 = shalt.err (!%p543_p5)
}
 0x1eb   : > { %s547_s6 = scalar_lea.hbm %s341_s28, 128  ;;  %s551_s9 = scalar_lea.hbm %s750_s3, 256 }
 0x1ec   : > { %p548_p6 = scmp.ne.s32.totalorder %s341_s28, %s547_s6  ;;  %p552_p10 = scmp.lt.s32.totalorder %s341_s28, %s750_s3 }
 0x1ed   : > { %p553_p11 = scmp.lt.s32.totalorder %s551_s9, %s547_s6 }
 0x1ee   : > { %p549_p7 = pnand %p548_p6, %p674_p4 }
 0x1ef   : > { %p554_p12 = por %p553_p11, %p552_p10 }
 0x1f0   : > { %p550_p9 = pneg %p549_p7 }
 0x1f2   : > { %p555_p13 = pnand %p554_p12, %p550_p9 }
 0x1f4   : > { %558 = shalt.err (!%p555_p13)
}
 0x1f5   : > { %469 = dma.vmem_to_hbm [thread:$0]  (%p674_p4), %s344_s23, 128, %s341_s28, %s327_s29  }
 0x1f6 PF: > { %p475_p0 = scmp.ge.s32.totalorder %s609_s17, 2  ;;  %s355_s18 = sand.u32 1, %s589_s12  }
 0x1f7   : > { %s356_s19 = scalar_lea.sflag [#allocation3], %s355_s18 }
 0x1f8   : > { %p472_p1 = pnand %p475_p0, %p681_p8 }
 0x1fa   : > { %p473_p2 = pneg %p472_p1 }
 0x1fc   : > { %584 = dma.done.wait (%p473_p2), %s356_s19, 128  }
 0x1fd   : > { %586 = vsyncadd (%p473_p2), %s356_s19, 4294967168  ;;  %s16_s17 = sadd.s32 1, %s609_s17   ;;  %s753_s12 = smov %s593_s13 }
 0x1fe   : > { %p13_p3 = scmp.ge.s32.totalorder %s16_s17, 4   ;;  %s754_s13 = smov %s597_s14 }
 0x1ff   : > { %s755_s14 = smov %s687_s25  ;;  %s756_s15 = smov %s605_s16 }
 0x200   : > { %s757_s16 = smov %s759_s20  ;;  %15 = sbr.rel (!%p13_p3) target bundleno = 4 (0x4), region = 73 }
 0x205   :  { %361 = vsyncpa [#allocation3], 1 }
 0x206   :  { %363 = vsyncpa [#allocation3 + $0x1], 1 }

</bundles_post_ra>
